<compile_context>
chip_gen: v5e
topology: v5e:2x2
jax: 0.10.0
libtpu: 0.0.40
codegen_flags: <defaults>
</compile_context>

<pallas_src>
import functools
import math

import jax
import jax.numpy as jnp
from jax import lax
from jax.experimental import pallas as pl
from jax.experimental.pallas import tpu as pltpu

_EPS = 1e-6


def _acos_f32(x):
    """float32 arccos from mul/add/div/sqrt/where only (Mosaic-safe).

    fdlibm asinf kernel: asin(t) = t + t*R(t^2) for |t| <= 0.5 plus the
    half-angle reduction acos(|x|) = 2*asin(sqrt((1-|x|)/2)) for |x| > 0.5.
    R() is evaluated once on a branch-selected argument (single EUP divide).
    """
    pio2 = 1.5707963267948966
    pi = 3.141592653589793

    ax = jnp.abs(x)
    small_branch = ax <= 0.5
    z = jnp.where(small_branch, x * x, (1.0 - ax) * 0.5)
    p = z * (0.16666586697 + z * (-0.042743422091 + z * (-0.0086563630030)))
    q = 1.0 + z * (-0.70662963390)
    r = p / q
    s = jnp.sqrt(z)                         # == |x| in the small branch (unused there)

    small = pio2 - (x + x * r)              # |x| <= 0.5
    big_pos = 2.0 * (s + s * r)             # |x| >  0.5, x > 0
    big = jnp.where(x < 0.0, pi - big_pos, big_pos)
    return jnp.where(small_branch, small, big)


def _hloss_kernel(y_ref, gt_ref, gmask_ref, out_ref, *,
                  bt, rps, c, width, hw_real, w_abs, w_sam, w_grad):
    """One grid step: `bt` samples packed as (bt*rps, HWp) rows (rps >= c)."""
    rows = bt * rps
    y = y_ref[...].astype(jnp.float32)      # (rows, HWp)
    gt = gt_ref[...].astype(jnp.float32)
    gmask = gmask_ref[...]                  # (1, HWp): 1.0 where h>=1 & w>=1 (0 on pads)
    hw_pad = y.shape[1]

    # ---- static per-row masks from iota (no sample-boundary leakage) ----
    row = lax.broadcasted_iota(jnp.int32, (rows, 1), 0)
    is_start = row == 0                                   # channel 0 of sample 0
    in_core = (row >= 1) & (row <= c - 1)                 # channels 1..c-1 of sample 0
    for b in range(1, bt):
        lo = b * rps
        is_start = is_start | (row == lo)
        in_core = in_core | ((row >= lo + 1) & (row <= lo + c - 1))
    sam_rmask = jnp.where(is_start, 1.0, 0.0).astype(jnp.float32)   # (rows, 1)
    grad_rmask = jnp.where(in_core, 1.0, 0.0).astype(jnp.float32)   # (rows, 1)

    # ---- loss1 partial: sum |y - gt| (zero padding contributes 0) ----
    abs_sum = jnp.sum(jnp.abs(y - gt))

    # ---- SAM partial: per-sample channel sums via exact f32 roll-accumulate ----
    def chan_sum(a):
        # row b*rps of the result holds sum over that sample's c real channels.
        acc = a
        for k in range(1, c):
            acc = acc + pltpu.roll(a, shift=rows - k, axis=0)   # a[r + k]
        return acc

    inner = chan_sum(y * gt)
    n1 = chan_sum(y * y)
    n2 = chan_sum(gt * gt)
    inv = lax.rsqrt(jnp.maximum(n1, 1e-30)) * lax.rsqrt(jnp.maximum(n2, 1e-30))
    cosa = jnp.clip(inner * inv, -1.0 + _EPS, 1.0 - _EPS)
    sam_mask = sam_rmask
    if hw_real != hw_pad:                    # exclude lane padding from the SAM mean
        lane = lax.broadcasted_iota(jnp.int32, (1, hw_pad), 1)
        sam_mask = sam_rmask * (lane < hw_real).astype(jnp.float32)
    acos_sum = jnp.sum(_acos_f32(cosa) * sam_mask)

    # ---- gradient-difference L1 partial (XLU rolls + masks, no slicing) ----
    def grad_mag(v):
        gx = v - pltpu.roll(v, shift=width, axis=1)   # v[r, p] - v[r, p - W]
        gy = v - pltpu.roll(v, shift=1, axis=1)       # v[r, p] - v[r, p - 1]
        gc = v - pltpu.roll(v, shift=1, axis=0)       # v[r, p] - v[r - 1, p]
        return jnp.sqrt(gx * gx + gy * gy + gc * gc + _EPS)

    grad_sum = jnp.sum(jnp.abs(grad_mag(y) - grad_mag(gt)) * (grad_rmask * gmask))

    # ---- single fused, pre-weighted output: one full-vreg unmasked store ----
    contrib = abs_sum * w_abs + acos_sum * w_sam + grad_sum * w_grad
    out_ref[...] = jnp.full((1, 8, 128), contrib, dtype=jnp.float32)


def hloss(y, gt, la1, la2):
    """Forward pass of HLoss(la1, la2)(y, gt) (sam=True, gra=True)."""
    assert y.shape == gt.shape and y.ndim == 4
    B, C, H, W = y.shape
    assert C >= 2 and H >= 2 and W >= 2
    HW = H * W
    HWp = ((HW + 127) // 128) * 128          # lane-align the flattened spatial axis

    # ---- packing: bt samples / block, rps rows per sample (rps >= C) ----
    base = 8 // math.gcd(C, 8)               # smallest bt with bt*C % 8 == 0 (f32 sublanes)
    if B % base == 0:
        bt, rps = base, C
        # Grow the block while it (a) keeps the grid length >= 2 (feeds both v7x
        # TensorCores), (b) still divides B, (c) stays within a conservative
        # per-input budget so 2 inputs x 2 buffers + f32 temporaries fit v7x's
        # 64 MiB physical / 32 MiB scoped VMEM.
        budget = 2 * 1024 * 1024
        while (B % (bt * 2) == 0 and B // (bt * 2) >= 2
               and (bt * 2) * rps * HWp * y.dtype.itemsize <= budget):
            bt *= 2
    else:
        # TODO(synk): pad the batch (with a per-row validity mask) instead of
        # falling back to single-sample blocks with padded channel rows.
        bt, rps = 1, ((C + 7) // 8) * 8
    G = B // bt
    R = bt * rps

    def to2d(x):
        x3 = x.reshape(B, C, HW)
        if HWp != HW:
            x3 = jnp.pad(x3, ((0, 0), (0, 0), (0, HWp - HW)))
        if rps != C:
            x3 = jnp.pad(x3, ((0, 0), (0, rps - C), (0, 0)))
        return x3.reshape(B * rps, HWp)

    y2 = to2d(y)
    gt2 = to2d(gt)

    # Lane mask for the gradient term: (h >= 1) & (w >= 1); zero on lane padding.
    gm = ((jnp.arange(H) >= 1)[:, None] & (jnp.arange(W) >= 1)[None, :])
    gm = gm.astype(jnp.float32).reshape(1, HW)
    if HWp != HW:
        gm = jnp.pad(gm, ((0, 0), (0, HWp - HW)))

    n_elem = B * C * H * W
    n_pix = B * H * W
    n_grad = B * (C - 1) * (H - 1) * (W - 1)
    kernel = functools.partial(
        _hloss_kernel, bt=bt, rps=rps, c=C, width=W, hw_real=HW,
        w_abs=1.0 / n_elem,
        w_sam=float(la1) / (n_pix * math.pi),
        w_grad=float(la2) / n_grad)

    sample_spec = pl.BlockSpec((R, HWp), lambda b: (b, 0))
    out = pl.pallas_call(
        kernel,
        out_shape=jax.ShapeDtypeStruct((G, 8, 128), jnp.float32),
        grid_spec=pltpu.PrefetchScalarGridSpec(
            num_scalar_prefetch=0,
            grid=(G,),
            in_specs=[sample_spec, sample_spec,
                      pl.BlockSpec((1, HWp), lambda b: (0, 0))],
            out_specs=pl.BlockSpec((1, 8, 128), lambda b: (b, 0, 0)),
        ),
        compiler_params=pltpu.CompilerParams(
            dimension_semantics=("parallel",)),
    )(y2, gt2, gm)

    return jnp.sum(out[:, 0, 0])


# ----------------------------- pure-JAX reference -----------------------------
def _grad_mag_ref(v):
    core = v[:, 1:, 1:, 1:]
    gx = core - v[:, 1:, :-1, 1:]
    gy = core - v[:, 1:, 1:, :-1]
    gc = core - v[:, :-1, 1:, 1:]
    return jnp.sqrt(gx * gx + gy * gy + gc * gc + _EPS)


def hloss_ref(y, gt, la1, la2):
    """Pure-JAX reference (mirrors the PyTorch module exactly)."""
    y = y.astype(jnp.float32)
    gt = gt.astype(jnp.float32)
    loss1 = jnp.mean(jnp.abs(y - gt))
    inner = jnp.sum(y * gt, axis=1, keepdims=True)
    len1 = jnp.sqrt(jnp.sum(y * y, axis=1, keepdims=True))
    len2 = jnp.sqrt(jnp.sum(gt * gt, axis=1, keepdims=True))
    divisor = len1 * len2
    divisor = divisor + (divisor == 0.0).astype(jnp.float32) * _EPS
    cosa = jnp.clip(jnp.sum(inner / divisor, axis=1), -1.0 + _EPS, 1.0 - _EPS)
    sam = jnp.mean(jnp.arccos(cosa)) / math.pi
    loss3 = jnp.mean(jnp.abs(_grad_mag_ref(y) - _grad_mag_ref(gt)))
    return loss1 + la1 * sam + la2 * loss3


if __name__ == "__main__":
    # Deterministic "parameters" of HLoss.__init__ (la1, la2); sam=gra=True.
    LA1 = 0.1
    LA2 = 0.1

    key = jax.random.PRNGKey(0)
    ky, kgt = jax.random.split(key)
    B, C, H, W = 2, 4, 16, 16
    y = jax.random.normal(ky, (B, C, H, W), dtype=jnp.float32)
    gt = jax.random.normal(kgt, (B, C, H, W), dtype=jnp.float32)

    loss = jax.jit(hloss, static_argnums=(2, 3))(y, gt, LA1, LA2)
    loss = jax.block_until_ready(loss)

    ref = jax.block_until_ready(hloss_ref(y, gt, LA1, LA2))
    assert jnp.allclose(loss, ref, rtol=1e-5, atol=1e-5), (loss, ref)

    print("KERNEL_OK")
</pallas_src>

<mosaic_0001>
module attributes {stable_mosaic.version = 11 : i64} {
  func.func @_hloss_kernel(%arg0: i32, %arg1: memref<8x256xf32, #tpu.memory_space<vmem>>, %arg2: memref<8x256xf32, #tpu.memory_space<vmem>>, %arg3: memref<1x256xf32, #tpu.memory_space<vmem>>, %arg4: memref<1x8x128xf32, #tpu.memory_space<vmem>>) attributes {dimension_semantics = [#tpu.dimension_semantics<parallel>], iteration_bounds = array<i64: 1>, scalar_prefetch = 0 : i64, scratch_operands = 0 : i64, tpu.core_type = #tpu.core_type<tc>, window_params = [{transform_indices = @transform_0, window_bounds = array<i64: 8, 256>}, {transform_indices = @transform_1, window_bounds = array<i64: 8, 256>}, {pipeline_mode = #tpu.pipeline_mode<synchronous>, transform_indices = @transform_2, window_bounds = array<i64: 1, 256>}, {transform_indices = @transform_3, window_bounds = array<i64: 1, 8, 128>}]} {
    %c0 = arith.constant 0 : index
    %c0_0 = arith.constant 0 : index
    %0 = vector.load %arg1[%c0, %c0_0] : memref<8x256xf32, #tpu.memory_space<vmem>>, vector<8x256xf32>
    %c0_1 = arith.constant 0 : index
    %c0_2 = arith.constant 0 : index
    %1 = vector.load %arg2[%c0_1, %c0_2] : memref<8x256xf32, #tpu.memory_space<vmem>>, vector<8x256xf32>
    %c0_3 = arith.constant 0 : index
    %c0_4 = arith.constant 0 : index
    %2 = vector.load %arg3[%c0_3, %c0_4] : memref<1x256xf32, #tpu.memory_space<vmem>>, vector<1x256xf32>
    %3 = tpu.iota {dimensions = array<i32: 0>} : vector<8x1xi32>
    %c0_i32 = arith.constant 0 : i32
    %4 = vector.broadcast %c0_i32 : i32 to vector<8x1xi32>
    %5 = arith.cmpi eq, %3, %4 : vector<8x1xi32>
    %c1_i32 = arith.constant 1 : i32
    %6 = vector.broadcast %c1_i32 : i32 to vector<8x1xi32>
    %7 = arith.cmpi sge, %3, %6 : vector<8x1xi32>
    %c3_i32 = arith.constant 3 : i32
    %8 = vector.broadcast %c3_i32 : i32 to vector<8x1xi32>
    %9 = arith.cmpi sle, %3, %8 : vector<8x1xi32>
    %10 = arith.andi %7, %9 : vector<8x1xi1>
    %c4_i32 = arith.constant 4 : i32
    %11 = vector.broadcast %c4_i32 : i32 to vector<8x1xi32>
    %12 = arith.cmpi eq, %3, %11 : vector<8x1xi32>
    %13 = arith.ori %5, %12 : vector<8x1xi1>
    %c5_i32 = arith.constant 5 : i32
    %14 = vector.broadcast %c5_i32 : i32 to vector<8x1xi32>
    %15 = arith.cmpi sge, %3, %14 : vector<8x1xi32>
    %c7_i32 = arith.constant 7 : i32
    %16 = vector.broadcast %c7_i32 : i32 to vector<8x1xi32>
    %17 = arith.cmpi sle, %3, %16 : vector<8x1xi32>
    %18 = arith.andi %15, %17 : vector<8x1xi1>
    %19 = arith.ori %10, %18 : vector<8x1xi1>
    %cst = arith.constant 1.000000e+00 : f32
    %cst_5 = arith.constant 0.000000e+00 : f32
    %20 = vector.broadcast %cst : f32 to vector<8x1xf32>
    %21 = vector.broadcast %cst_5 : f32 to vector<8x1xf32>
    %22 = arith.select %13, %20, %21 : vector<8x1xi1>, vector<8x1xf32>
    %cst_6 = arith.constant 1.000000e+00 : f32
    %cst_7 = arith.constant 0.000000e+00 : f32
    %23 = vector.broadcast %cst_6 : f32 to vector<8x1xf32>
    %24 = vector.broadcast %cst_7 : f32 to vector<8x1xf32>
    %25 = arith.select %19, %23, %24 : vector<8x1xi1>, vector<8x1xf32>
    %26 = arith.subf %0, %1 : vector<8x256xf32>
    %27 = math.absf %26 : vector<8x256xf32>
    %28 = vector.shape_cast %27 : vector<8x256xf32> to vector<1x8x256xf32>
    %cst_8 = arith.constant dense<0.000000e+00> : vector<1xf32>
    %29 = vector.multi_reduction <add>, %28, %cst_8 [1, 2] : vector<1x8x256xf32> to vector<1xf32>
    %30 = vector.shape_cast %29 : vector<1xf32> to vector<1x1x1xf32>
    %31 = vector.extract %30[0, 0, 0] : f32 from vector<1x1x1xf32>
    %32 = arith.mulf %0, %1 : vector<8x256xf32>
    %c7_i32_9 = arith.constant 7 : i32
    %33 = tpu.dynamic_rotate %32 by %c7_i32_9 dim 0 : vector<8x256xf32>, i32 -> vector<8x256xf32>
    %34 = arith.addf %32, %33 : vector<8x256xf32>
    %c6_i32 = arith.constant 6 : i32
    %35 = tpu.dynamic_rotate %32 by %c6_i32 dim 0 : vector<8x256xf32>, i32 -> vector<8x256xf32>
    %36 = arith.addf %34, %35 : vector<8x256xf32>
    %c5_i32_10 = arith.constant 5 : i32
    %37 = tpu.dynamic_rotate %32 by %c5_i32_10 dim 0 : vector<8x256xf32>, i32 -> vector<8x256xf32>
    %38 = arith.addf %36, %37 : vector<8x256xf32>
    %39 = arith.mulf %0, %0 : vector<8x256xf32>
    %c7_i32_11 = arith.constant 7 : i32
    %40 = tpu.dynamic_rotate %39 by %c7_i32_11 dim 0 : vector<8x256xf32>, i32 -> vector<8x256xf32>
    %41 = arith.addf %39, %40 : vector<8x256xf32>
    %c6_i32_12 = arith.constant 6 : i32
    %42 = tpu.dynamic_rotate %39 by %c6_i32_12 dim 0 : vector<8x256xf32>, i32 -> vector<8x256xf32>
    %43 = arith.addf %41, %42 : vector<8x256xf32>
    %c5_i32_13 = arith.constant 5 : i32
    %44 = tpu.dynamic_rotate %39 by %c5_i32_13 dim 0 : vector<8x256xf32>, i32 -> vector<8x256xf32>
    %45 = arith.addf %43, %44 : vector<8x256xf32>
    %46 = arith.mulf %1, %1 : vector<8x256xf32>
    %c7_i32_14 = arith.constant 7 : i32
    %47 = tpu.dynamic_rotate %46 by %c7_i32_14 dim 0 : vector<8x256xf32>, i32 -> vector<8x256xf32>
    %48 = arith.addf %46, %47 : vector<8x256xf32>
    %c6_i32_15 = arith.constant 6 : i32
    %49 = tpu.dynamic_rotate %46 by %c6_i32_15 dim 0 : vector<8x256xf32>, i32 -> vector<8x256xf32>
    %50 = arith.addf %48, %49 : vector<8x256xf32>
    %c5_i32_16 = arith.constant 5 : i32
    %51 = tpu.dynamic_rotate %46 by %c5_i32_16 dim 0 : vector<8x256xf32>, i32 -> vector<8x256xf32>
    %52 = arith.addf %50, %51 : vector<8x256xf32>
    %cst_17 = arith.constant 1.000000e-30 : f32
    %53 = vector.broadcast %cst_17 : f32 to vector<8x256xf32>
    %54 = arith.maximumf %45, %53 : vector<8x256xf32>
    %55 = math.rsqrt %54 : vector<8x256xf32>
    %cst_18 = arith.constant 1.000000e-30 : f32
    %56 = vector.broadcast %cst_18 : f32 to vector<8x256xf32>
    %57 = arith.maximumf %52, %56 : vector<8x256xf32>
    %58 = math.rsqrt %57 : vector<8x256xf32>
    %59 = arith.mulf %55, %58 : vector<8x256xf32>
    %60 = arith.mulf %38, %59 : vector<8x256xf32>
    %cst_19 = arith.constant -0.999998986 : f32
    %cst_20 = arith.constant 0.999998986 : f32
    %61 = vector.broadcast %cst_19 : f32 to vector<8x256xf32>
    %62 = arith.maximumf %61, %60 : vector<8x256xf32>
    %63 = vector.broadcast %cst_20 : f32 to vector<8x256xf32>
    %64 = arith.minimumf %63, %62 : vector<8x256xf32>
    %65 = math.absf %64 : vector<8x256xf32>
    %cst_21 = arith.constant 5.000000e-01 : f32
    %66 = vector.broadcast %cst_21 : f32 to vector<8x256xf32>
    %67 = arith.cmpf ole, %65, %66 : vector<8x256xf32>
    %68 = arith.mulf %64, %64 : vector<8x256xf32>
    %cst_22 = arith.constant 1.000000e+00 : f32
    %69 = vector.broadcast %cst_22 : f32 to vector<8x256xf32>
    %70 = arith.subf %69, %65 : vector<8x256xf32>
    %cst_23 = arith.constant 5.000000e-01 : f32
    %71 = vector.broadcast %cst_23 : f32 to vector<8x256xf32>
    %72 = arith.mulf %70, %71 : vector<8x256xf32>
    %73 = arith.select %67, %68, %72 : vector<8x256xi1>, vector<8x256xf32>
    %cst_24 = arith.constant -0.008656363 : f32
    %74 = vector.broadcast %cst_24 : f32 to vector<8x256xf32>
    %75 = arith.mulf %73, %74 : vector<8x256xf32>
    %cst_25 = arith.constant -0.0427434221 : f32
    %76 = vector.broadcast %cst_25 : f32 to vector<8x256xf32>
    %77 = arith.addf %76, %75 : vector<8x256xf32>
    %78 = arith.mulf %73, %77 : vector<8x256xf32>
    %cst_26 = arith.constant 0.166665867 : f32
    %79 = vector.broadcast %cst_26 : f32 to vector<8x256xf32>
    %80 = arith.addf %79, %78 : vector<8x256xf32>
    %81 = arith.mulf %73, %80 : vector<8x256xf32>
    %cst_27 = arith.constant -0.706629634 : f32
    %82 = vector.broadcast %cst_27 : f32 to vector<8x256xf32>
    %83 = arith.mulf %73, %82 : vector<8x256xf32>
    %cst_28 = arith.constant 1.000000e+00 : f32
    %84 = vector.broadcast %cst_28 : f32 to vector<8x256xf32>
    %85 = arith.addf %84, %83 : vector<8x256xf32>
    %86 = arith.divf %81, %85 : vector<8x256xf32>
    %87 = math.sqrt %73 : vector<8x256xf32>
    %88 = arith.mulf %64, %86 : vector<8x256xf32>
    %89 = arith.addf %64, %88 : vector<8x256xf32>
    %cst_29 = arith.constant 1.57079637 : f32
    %90 = vector.broadcast %cst_29 : f32 to vector<8x256xf32>
    %91 = arith.subf %90, %89 : vector<8x256xf32>
    %92 = arith.mulf %87, %86 : vector<8x256xf32>
    %93 = arith.addf %87, %92 : vector<8x256xf32>
    %cst_30 = arith.constant 2.000000e+00 : f32
    %94 = vector.broadcast %cst_30 : f32 to vector<8x256xf32>
    %95 = arith.mulf %94, %93 : vector<8x256xf32>
    %cst_31 = arith.constant 0.000000e+00 : f32
    %96 = vector.broadcast %cst_31 : f32 to vector<8x256xf32>
    %97 = arith.cmpf olt, %64, %96 : vector<8x256xf32>
    %cst_32 = arith.constant 3.14159274 : f32
    %98 = vector.broadcast %cst_32 : f32 to vector<8x256xf32>
    %99 = arith.subf %98, %95 : vector<8x256xf32>
    %100 = arith.select %97, %99, %95 : vector<8x256xi1>, vector<8x256xf32>
    %101 = arith.select %67, %91, %100 : vector<8x256xi1>, vector<8x256xf32>
    %102 = vector.broadcast %22 : vector<8x1xf32> to vector<8x256xf32>
    %103 = arith.mulf %101, %102 : vector<8x256xf32>
    %104 = vector.shape_cast %103 : vector<8x256xf32> to vector<1x8x256xf32>
    %cst_33 = arith.constant dense<0.000000e+00> : vector<1xf32>
    %105 = vector.multi_reduction <add>, %104, %cst_33 [1, 2] : vector<1x8x256xf32> to vector<1xf32>
    %106 = vector.shape_cast %105 : vector<1xf32> to vector<1x1x1xf32>
    %107 = vector.extract %106[0, 0, 0] : f32 from vector<1x1x1xf32>
    %c16_i32 = arith.constant 16 : i32
    %108 = tpu.dynamic_rotate %0 by %c16_i32 dim 1 : vector<8x256xf32>, i32 -> vector<8x256xf32>
    %109 = arith.subf %0, %108 : vector<8x256xf32>
    %c1_i32_34 = arith.constant 1 : i32
    %110 = tpu.dynamic_rotate %0 by %c1_i32_34 dim 1 : vector<8x256xf32>, i32 -> vector<8x256xf32>
    %111 = arith.subf %0, %110 : vector<8x256xf32>
    %c1_i32_35 = arith.constant 1 : i32
    %112 = tpu.dynamic_rotate %0 by %c1_i32_35 dim 0 : vector<8x256xf32>, i32 -> vector<8x256xf32>
    %113 = arith.subf %0, %112 : vector<8x256xf32>
    %114 = arith.mulf %109, %109 : vector<8x256xf32>
    %115 = arith.mulf %111, %111 : vector<8x256xf32>
    %116 = arith.addf %114, %115 : vector<8x256xf32>
    %117 = arith.mulf %113, %113 : vector<8x256xf32>
    %118 = arith.addf %116, %117 : vector<8x256xf32>
    %cst_36 = arith.constant 9.99999997E-7 : f32
    %119 = vector.broadcast %cst_36 : f32 to vector<8x256xf32>
    %120 = arith.addf %118, %119 : vector<8x256xf32>
    %121 = math.sqrt %120 : vector<8x256xf32>
    %c16_i32_37 = arith.constant 16 : i32
    %122 = tpu.dynamic_rotate %1 by %c16_i32_37 dim 1 : vector<8x256xf32>, i32 -> vector<8x256xf32>
    %123 = arith.subf %1, %122 : vector<8x256xf32>
    %c1_i32_38 = arith.constant 1 : i32
    %124 = tpu.dynamic_rotate %1 by %c1_i32_38 dim 1 : vector<8x256xf32>, i32 -> vector<8x256xf32>
    %125 = arith.subf %1, %124 : vector<8x256xf32>
    %c1_i32_39 = arith.constant 1 : i32
    %126 = tpu.dynamic_rotate %1 by %c1_i32_39 dim 0 : vector<8x256xf32>, i32 -> vector<8x256xf32>
    %127 = arith.subf %1, %126 : vector<8x256xf32>
    %128 = arith.mulf %123, %123 : vector<8x256xf32>
    %129 = arith.mulf %125, %125 : vector<8x256xf32>
    %130 = arith.addf %128, %129 : vector<8x256xf32>
    %131 = arith.mulf %127, %127 : vector<8x256xf32>
    %132 = arith.addf %130, %131 : vector<8x256xf32>
    %cst_40 = arith.constant 9.99999997E-7 : f32
    %133 = vector.broadcast %cst_40 : f32 to vector<8x256xf32>
    %134 = arith.addf %132, %133 : vector<8x256xf32>
    %135 = math.sqrt %134 : vector<8x256xf32>
    %136 = arith.subf %121, %135 : vector<8x256xf32>
    %137 = math.absf %136 : vector<8x256xf32>
    %138 = vector.broadcast %25 : vector<8x1xf32> to vector<8x256xf32>
    %139 = vector.broadcast %2 : vector<1x256xf32> to vector<8x256xf32>
    %140 = arith.mulf %138, %139 : vector<8x256xf32>
    %141 = arith.mulf %137, %140 : vector<8x256xf32>
    %142 = vector.shape_cast %141 : vector<8x256xf32> to vector<1x8x256xf32>
    %cst_41 = arith.constant dense<0.000000e+00> : vector<1xf32>
    %143 = vector.multi_reduction <add>, %142, %cst_41 [1, 2] : vector<1x8x256xf32> to vector<1xf32>
    %144 = vector.shape_cast %143 : vector<1xf32> to vector<1x1x1xf32>
    %145 = vector.extract %144[0, 0, 0] : f32 from vector<1x1x1xf32>
    %cst_42 = arith.constant 4.8828125E-4 : f32
    %146 = arith.mulf %31, %cst_42 : f32
    %cst_43 = arith.constant 6.216990e-05 : f32
    %147 = arith.mulf %107, %cst_43 : f32
    %148 = arith.addf %146, %147 : f32
    %cst_44 = arith.constant 7.40740724E-5 : f32
    %149 = arith.mulf %145, %cst_44 : f32
    %150 = arith.addf %148, %149 : f32
    %151 = vector.broadcast %150 : f32 to vector<1x8x128xf32>
    %c0_45 = arith.constant 0 : index
    %c0_46 = arith.constant 0 : index
    %c0_47 = arith.constant 0 : index
    %152 = vector.load %arg4[%c0_45, %c0_46, %c0_47] : memref<1x8x128xf32, #tpu.memory_space<vmem>>, vector<1x8x128xf32>
    tpu.vector_store %arg4[%c0_45, %c0_46, %c0_47], %151 {strides = array<i32>} : memref<1x8x128xf32, #tpu.memory_space<vmem>>, vector<1x8x128xf32>,
    return
  }
  func.func @transform_0(%arg0: i32) -> (i32, i32) {
    %c0_i32 = arith.constant 0 : i32
    %c0_i32_0 = arith.constant 0 : i32
    return %arg0, %c0_i32 : i32, i32
  }
  func.func @transform_1(%arg0: i32) -> (i32, i32) {
    %c0_i32 = arith.constant 0 : i32
    %c0_i32_0 = arith.constant 0 : i32
    return %arg0, %c0_i32 : i32, i32
  }
  func.func @transform_2(%arg0: i32) -> (i32, i32) {
    %c0_i32 = arith.constant 0 : i32
    %c0_i32_0 = arith.constant 0 : i32
    %c0_i32_1 = arith.constant 0 : i32
    return %c0_i32, %c0_i32_0 : i32, i32
  }
  func.func @transform_3(%arg0: i32) -> (i32, i32, i32) {
    %c0_i32 = arith.constant 0 : i32
    %c0_i32_0 = arith.constant 0 : i32
    %c0_i32_1 = arith.constant 0 : i32
    return %arg0, %c0_i32, %c0_i32_0 : i32, i32, i32
  }
}

</mosaic_0001>

<bundles_post_ra>
// kernel: hloss.1
= control target key start
LH: loop header
LB: loop body
LE: loop exit
PB: predicated region body
PF: predicated region fallthrough
CT: control target
= control target key end

     0   :  { %s438_s14 = smov 1   ;;  %s439_s15 = smov 16   ;;  %s710_s0 = inlined_call_operand.vmem [shape: f32[8,256], index: 0, kind: input, shape index: {}]   ;;  %s711_s1 = inlined_call_operand.vmem [shape: f32[8,256], index: 1, kind: input, shape index: {}]   ;;  %s712_s2 = inlined_call_operand.vmem [shape: f32[1,256], index: 2, kind: input, shape index: {}]   ;;  %s713_s3 = inlined_call_operand.vmem [shape: f32[1,8,128], index: 3, kind: output, shape index: {}]  }
   0x1   :  { %v464_v0 = vld [vmem:[%s710_s0] sm:$0xff]  ;;  %v477_v2 = vld [vmem:[%s710_s0 + $0x8] sm:$0xff] }
   0x2   :  { %264 = vrot.lane.b32.xlu1 %v464_v0, %s438_s14  ;;  %253 = vrot.lane.b32.xlu0 %v464_v0, %s439_s15  ;;  %v471_v1 = vld [vmem:[%s711_s1] sm:$0xff]  ;;  %v484_v3 = vld [vmem:[%s711_s1 + $0x8] sm:$0xff]  ;;  %v61_v4 = vmul.f32 %v464_v0, %v464_v0  ;;  %v62_v5 = vmul.f32 %v477_v2, %v477_v2 }
   0x3   :  { %313 = vrot.lane.b32.xlu2 %v471_v1, %s439_s15  ;;  %v76_v6 = vmul.f32 %v484_v3, %v484_v3  ;;  %v75_v7 = vmul.f32 %v471_v1, %v471_v1  ;;  %v47_v44 = vmul.f32 %v471_v1, %v464_v0  ;;  %v48_v45 = vmul.f32 %v484_v3, %v477_v2 }
   0x4   :  { %v63_v8 = vrot.slane %v61_v4, 1  ;;  %v64_v9 = vrot.slane %v62_v5, 1  ;;  %v67_v14 = vrot.slane %v61_v4, 2  ;;  %v68_v15 = vrot.slane %v62_v5, 2 }
   0x5   :  { %v77_v10 = vrot.slane %v75_v7, 1  ;;  %v78_v11 = vrot.slane %v76_v6, 1  ;;  %v81_v18 = vrot.slane %v75_v7, 2  ;;  %v82_v19 = vrot.slane %v76_v6, 2 }
   0x6   :  { %v65_v12 = vadd.f32 %v63_v8, %v61_v4  ;;  %v66_v13 = vadd.f32 %v64_v9, %v62_v5  ;;  %v71_v22 = vrot.slane %v61_v4, 3  ;;  %v72_v23 = vrot.slane %v62_v5, 3 }
   0x7   :  { %v79_v16 = vadd.f32 %v77_v10, %v75_v7  ;;  %v80_v17 = vadd.f32 %v78_v11, %v76_v6  ;;  %v85_v26 = vrot.slane %v75_v7, 3  ;;  %v86_v27 = vrot.slane %v76_v6, 3 }
   0x8   :  { %v69_v20 = vadd.f32 %v67_v14, %v65_v12  ;;  %v70_v21 = vadd.f32 %v68_v15, %v66_v13  ;;  %v49_v50 = vrot.slane %v47_v44, 1  ;;  %v50_v51 = vrot.slane %v48_v45, 1 }
   0x9   :  { %v83_v24 = vadd.f32 %v81_v18, %v79_v16  ;;  %v84_v25 = vadd.f32 %v82_v19, %v80_v17  ;;  %v53_v57 = vrot.slane %v47_v44, 2  ;;  %v54_v58 = vrot.slane %v48_v45, 2 }
   0xa   :  { %266 = vrot.lane.b32.xlu1 %v477_v2, %s438_s14  ;;  %255 = vrot.lane.b32.xlu0 %v477_v2, %s439_s15  ;;  %v73_v28 = vadd.f32 %v71_v22, %v69_v20  ;;  %v74_v29 = vadd.f32 %v72_v23, %v70_v21  ;;  %v51_v55 = vadd.f32 %v49_v50, %v47_v44  ;;  %v57_v63 = vrot.slane %v47_v44, 3 }
   0xb   :  { %315 = vrot.lane.b32.xlu2 %v484_v3, %s439_s15  ;;  %v87_v30 = vadd.f32 %v85_v26, %v83_v24  ;;  %v88_v31 = vadd.f32 %v86_v27, %v84_v25  ;;  %v52_v56 = vadd.f32 %v50_v51, %v48_v45  ;;  %v58_v7 = vrot.slane %v48_v45, 3 }
   0xc   :  { %v89_v32 = vmax.f32 %v73_v28, 1e-30  ;;  %v90_v33 = vmax.f32 %v74_v29, 1e-30  ;;  %v55_v62 = vadd.f32 %v53_v57, %v51_v55  ;;  %v19_v26 = vlaneseq }
   0xd   :  { %v111_v34 = vmax.f32 %v87_v30, 1e-30  ;;  %v112_v35 = vmax.f32 %v88_v31, 1e-30  ;;  %v56_v5 = vadd.f32 %v54_v58, %v52_v56  ;;  %v330_v57 = vrot.slane %v484_v3, 7 }
   0xe   :  { %414 = vrsqrt.f32 %v89_v32  ;;  %vm97_vm0 = vweird.f32 %v89_v32  ;;  %vm107_vm3 = vweird.f32 %v90_v33  ;;  %v59_v13 = vadd.f32 %v57_v63, %v55_v62 }
   0xf   :  { %416 = vrsqrt.f32 %v90_v33  ;;  %vm119_vm5 = vweird.f32 %v111_v34  ;;  %vm129_vm9 = vweird.f32 %v112_v35  ;;  %v60_v19 = vadd.f32 %v58_v7, %v56_v5 }
  0x10   :  { %418 = vrsqrt.f32 %v111_v34 }
  0x11   :  { %420 = vrsqrt.f32 %v112_v35 }
  0x12   :  { %323 = vrot.lane.b32.xlu1 %v484_v3, %s438_s14  ;;  %321 = vrot.lane.b32.xlu0 %v471_v1, %s438_s14 }
  0x14   :  { %v415_v36 = vpop.eup %414 }
  0x15   :  { %v417_v37 = vpop.eup %416  ;;  %v92_v38 = vmul.f32 %v415_v36, %v89_v32  ;;  %vm98_vm1 = vweird.f32 %v415_v36 }
  0x16   :  { %v419_v39 = vpop.eup %418  ;;  %v102_v40 = vmul.f32 %v417_v37, %v90_v33  ;;  %vm501_vm2 = vmor %vm97_vm0, %vm98_vm1  ;;  %vm108_vm4 = vweird.f32 %v417_v37  ;;  %v525_v33 = vand.u32 127, %v19_v26 }
  0x17   :  { %v421_v41 = vpop.eup %420  ;;  %v93_v42 = vmul.f32 %v415_v36, %v92_v38  ;;  %v114_v43 = vmul.f32 %v419_v39, %v111_v34  ;;  %vm505_vm6 = vmor %vm107_vm3, %vm108_vm4  ;;  %vm120_vm7 = vweird.f32 %v419_v39 }
  0x18   :  { %v103_v46 = vmul.f32 %v417_v37, %v102_v40  ;;  %v124_v49 = vmul.f32 %v421_v41, %v112_v35  ;;  %vm121_vm8 = vmor %vm119_vm5, %vm120_vm7  ;;  %vm130_vm10 = vweird.f32 %v421_v41  ;;  %vm259_vm14 = vcmp.lt.s32.totalorder %v525_v33, 16 }
  0x19   :  { %v94_v47 = vmul.f32 0.5, %v93_v42  ;;  %v115_v48 = vmul.f32 %v419_v39, %v114_v43  ;;  %vm131_vm11 = vmor %vm129_vm9, %vm130_vm10  ;;  %v274_v42 = vrot.slane %v477_v2, 7  ;;  %v273_v43 = vrot.slane %v464_v0, 7 }
  0x1a   :  { %v104_v52 = vmul.f32 0.5, %v103_v46  ;;  %v125_v60 = vmul.f32 %v421_v41, %v124_v49  ;;  %vm268_vm0 = vcmp.lt.s32.totalorder %v525_v33, 1 }
  0x1b   :  { %v95_v53 = vsub.f32 1.5, %v94_v47  ;;  %v116_v54 = vmul.f32 0.5, %v115_v48  ;;  %v276_v49 = vsub.f32 %v477_v2, %v274_v42 }
  0x1c   :  { %v105_v59 = vsub.f32 1.5, %v104_v52  ;;  %v126_v10 = vmul.f32 0.5, %v125_v60  ;;  %v275_v52 = vsub.f32 %v464_v0, %v273_v43 }
  0x1d   :  { %v96_v61 = vmul.f32 %v415_v36, %v95_v53  ;;  %v117_v6 = vsub.f32 1.5, %v116_v54  ;;  %v329_v53 = vrot.slane %v471_v1, 7  ;;  %v562_v62 = vmul.f32 %v276_v49, %v276_v49 }
  0x1e   :  { %v106_v8 = vmul.f32 %v417_v37, %v105_v59  ;;  %v127_v14 = vsub.f32 1.5, %v126_v10  ;;  %v565_v5 = vmul.f32 %v275_v52, %v275_v52  ;;  %v573_v10 = vsub.f32 %v484_v3, %v330_v57 }
  0x1f   :  { %v100_v11 = vsel %vm501_vm2, %v415_v36, %v96_v61  ;;  %v118_v12 = vmul.f32 %v419_v39, %v117_v6  ;;  %v560_v61 = vshrl.u32 %v19_v26, 7  ;;  %v331_v6 = vsub.f32 %v471_v1, %v329_v53 }
  0x20   :  { %v110_v16 = vsel %vm505_vm6, %v417_v37, %v106_v8  ;;  %v128_v17 = vmul.f32 %v421_v41, %v127_v14  ;;  %v34_v57 = vsub.f32 %v477_v2, %v484_v3  ;;  %v340_v33 = vmul.f32 %v573_v10, %v573_v10 }
  0x21   :  { %v122_v15 = vsel %vm121_vm8, %v419_v39, %v118_v12 }
  0x22   :  { %v133_v18 = vmul.f32 %v122_v15, %v100_v11  ;;  %v132_v20 = vsel %vm131_vm11, %v421_v41, %v128_v17 }
  0x23   :  { %v134_v22 = vmul.f32 %v132_v20, %v110_v16 }
  0x24   :  { %v135_v21 = vmul.f32 %v133_v18, %v59_v13 }
  0x25   :  { %v136_v25 = vmul.f32 %v134_v22, %v60_v19 }
  0x26   :  { %v513_v23 = vclamps-f32 %v135_v21, 0.999999  ;;  %v578_v21 = vmul.f32 %v331_v6, %v331_v6 }
  0x27   :  { %v516_v28 = vclamps-f32 %v136_v25, 0.999999 }
  0x28   :  { %v141_v27 = vand.u32 2147483647, %v513_v23  ;;  %v145_v29 = vmul.f32 %v513_v23, %v513_v23 }
  0x29   :  { %v142_v31 = vand.u32 2147483647, %v516_v28  ;;  %v146_v35 = vmul.f32 %v516_v28, %v516_v28 }
  0x2a   :  { %v147_v30 = vsub.f32 1.0, %v141_v27  ;;  %vm521_vm12 = vcmp.le.f32.partialorder %v141_v27, 0.5 }
  0x2b   :  { %v148_v36 = vsub.f32 1.0, %v142_v31  ;;  %vm529_vm13 = vcmp.le.f32.partialorder %v142_v31, 0.5 }
  0x2c   :  { %v149_v34 = vmul.f32 0.5, %v147_v30 }
  0x2d   :  { %v150_v39 = vmul.f32 0.5, %v148_v36 }
  0x2e   :  { %v535_v38 = vsel %vm521_vm12, %v145_v29, %v149_v34 }
  0x2f   :  { %v163_v40 = vmul.f32 -0.70662963, %v535_v38  ;;  %422 = vrsqrt.f32 %v535_v38  ;;  %v544_v44 = vsel %vm529_vm13, %v146_v35, %v150_v39  ;;  %v153_v54 = vmul.f32 -0.008656363, %v535_v38 }
  0x30   :  { %v164_v46 = vmul.f32 -0.70662963, %v544_v44  ;;  %v154_v55 = vmul.f32 -0.008656363, %v544_v44  ;;  %vm204_vm7 = vcmp.eq.f32.partialorder %v535_v38, inf  ;;  %vm206_vm9 = vcmp.eq.f32.partialorder %v535_v38, 0.0 }
  0x31   :  { %v165_v45 = vadd.f32 1.0, %v163_v40  ;;  %v155_v59 = vadd.f32 -0.042743422, %v153_v54  ;;  %vm216_vm10 = vcmp.eq.f32.partialorder %v544_v44, inf  ;;  %vm218_vm11 = vcmp.eq.f32.partialorder %v544_v44, 0.0 }
  0x32   :  { %v166_v50 = vadd.f32 1.0, %v164_v46  ;;  %v156_v60 = vadd.f32 -0.042743422, %v154_v55 }
  0x33   :  { %424 = vrcp.f32 %v165_v45  ;;  %v157_v7 = vmul.f32 %v155_v59, %v535_v38  ;;  %v176_v12 = vand.u32 2147483647, %v165_v45  ;;  %vm172_vm15 = vweird.f32 %v165_v45 }
  0x34   :  { %426 = vrcp.f32 %v166_v50  ;;  %v158_v8 = vmul.f32 %v156_v60, %v544_v44  ;;  %v178_v15 = vand.u32 2147483648, %v165_v45  ;;  %v193_v25 = vand.u32 2147483648, %v166_v50 }
  0x35   :  { %v423_v51 = vpop.eup %422  ;;  %428 = vrsqrt.f32 %v544_v44  ;;  %v159_v14 = vadd.f32 0.16666587, %v157_v7  ;;  %vm580_vm2 = vcmp.eq.f32.partialorder %v176_v12, 8.507059e+37  ;;  %vm187_vm3 = vweird.f32 %v166_v50 }
  0x36   :  { %v198_v63 = vmul.f32 %v423_v51, %v535_v38  ;;  %v160_v17 = vadd.f32 0.16666587, %v158_v8  ;;  %v179_v36 = vor.u32 1.1754944e-38, %v178_v15 }
  0x37   :  { %v161_v34 = vmul.f32 %v159_v14, %v535_v38  ;;  %v36_v14 = vand.u32 2147483647, %v34_v57 }
  0x38   :  { %v199_v19 = vmul.f32 %v423_v51, %v198_v63  ;;  %v162_v40 = vmul.f32 %v160_v17, %v544_v44  ;;  %v219_v63 = vand.u32 2147483648, %v544_v44 }
  0x39   :  { %v425_v4 = vpop.eup %424 }
  0x3a   :  { %v168_v11 = vmul.f32 %v425_v4, %v165_v45  ;;  %v427_v16 = vpop.eup %426  ;;  %vm173_vm1 = vweird.f32 %v425_v4  ;;  %v200_v31 = vmul.f32 0.5, %v199_v19 }
  0x3b   :  { %v429_v20 = vpop.eup %428  ;;  %v183_v22 = vmul.f32 %v427_v16, %v166_v50  ;;  %vm586_vm4 = vmor %vm172_vm15, %vm173_vm1  ;;  %vm188_vm5 = vweird.f32 %v427_v16  ;;  %vm25_vm15 = vcmp.eq.s32.totalorder %v560_v61, 4 }
  0x3c   :  { %v169_v18 = vsub.f32 1.0, %v168_v11  ;;  %v201_v42 = vsub.f32 1.5, %v200_v31  ;;  %v210_v43 = vmul.f32 %v429_v20, %v544_v44  ;;  %vm600_vm8 = vmor %vm187_vm3, %vm188_vm5  ;;  %vm23_vm3 = vcmp.le.s32.totalorder %v560_v61, 3 }
  0x3d   :  { %v184_v39 = vsub.f32 1.0, %v183_v22 }
  0x3e   :  { %v170_v29 = vmul.f32 %v425_v4, %v169_v18  ;;  %v202_v52 = vmul.f32 %v423_v51, %v201_v42  ;;  %v211_v53 = vmul.f32 %v429_v20, %v210_v43 }
  0x3f   :  { %v185_v46 = vmul.f32 %v427_v16, %v184_v39 }
  0x40   :  { %v212_v59 = vmul.f32 0.5, %v211_v53 }
  0x41   :  { %v186_v55 = vadd.f32 %v427_v16, %v185_v46 }
  0x42   :  { %v213_v12 = vsub.f32 1.5, %v212_v59 }
  0x43   :  { %v190_v60 = vsel %vm600_vm8, %v427_v16, %v186_v55 }
  0x44   :  { %v214_v31 = vmul.f32 %v429_v20, %v213_v12 }
  0x5d   :  { %v314_v24 = vpop.permute.xlu2 %313 }
  0x65   :  { %v316_v41 = vpop.permute.xlu2 %315 }
  0x66   :  { %v318_v47 = vsel %vm259_vm14, %v316_v41, %v314_v24  ;;  %v317_v48 = vsel %vm259_vm14, %v314_v24, %v316_v41  ;;  %v191_v24 = vand.u32 2147483647, %v166_v50  ;;  %v171_v41 = vadd.f32 %v425_v4, %v170_v29 }
  0x67   :  { %v319_v56 = vsub.f32 %v471_v1, %v318_v47  ;;  %v320_v58 = vsub.f32 %v484_v3, %v317_v48  ;;  %v194_v48 = vor.u32 1.1754944e-38, %v193_v25  ;;  %v203_v50 = vmul.f32 %v202_v52, %v535_v38 }
  0x68   :  { %vm592_vm6 = vcmp.eq.f32.partialorder %v191_v24, 8.507059e+37  ;;  %v175_v45 = vsel %vm586_vm4, %v425_v4, %v171_v41  ;;  %vm27_vm4 = vcmp.ge.s32.totalorder %v560_v61, 5 }
  0x69   :  { %v570_v9 = vmul.f32 %v319_v56, %v319_v56  ;;  %v575_v13 = vmul.f32 %v320_v58, %v320_v58  ;;  %v180_v54 = vsel %vm580_vm2, %v179_v36, %v175_v45  ;;  %v33_v56 = vsub.f32 %v464_v0, %v471_v1 }
  0x6a   :  { %v207_v58 = vand.u32 2147483648, %v535_v38  ;;  %v181_v51 = vmul.f32 %v180_v54, %v161_v34  ;;  %v195_v8 = vsel %vm592_vm6, %v194_v48, %v190_v60  ;;  %v205_v11 = vsel %vm204_vm7, %v535_v38, %v203_v50 }
  0x6b   :  { %v35_v4 = vand.u32 2147483647, %v33_v56  ;;  %v196_v29 = vmul.f32 %v195_v8, %v162_v40  ;;  %vm234_vm2 = vcmp.lt.f32.partialorder %v516_v28, 0.0 }
  0x6c   :  { %v208_v30 = vsel %vm206_vm9, %v207_v58, %v205_v11 }
  0x6d   :  { %v222_v41 = vmul.f32 %v516_v28, %v196_v29  ;;  %v37_v38 = vadd.f32 %v36_v14, %v35_v4 }
  0x6f   :  { %38 = vadd.xlane.f32.xlu2 %v37_v38  ;;  %v224_v54 = vadd.f32 %v516_v28, %v222_v41 }
  0x71   :  { %v226_v10 = vsub.f32 1.5707964, %v224_v54 }
  0x74   :  { %v265_v26 = vpop.permute.xlu1 %264  ;;  %v254_v27 = vpop.permute.xlu0 %253 }
  0x7c   :  { %v267_v6 = vpop.permute.xlu1 %266  ;;  %v256_v7 = vpop.permute.xlu0 %255 }
  0x7d   :  { %v269_v15 = vsel %vm268_vm0, %v265_v26, %v267_v6  ;;  %v270_v16 = vsel %vm268_vm0, %v267_v6, %v265_v26  ;;  %v260_v17 = vsel %vm259_vm14, %v254_v27, %v256_v7  ;;  %v261_v18 = vsel %vm259_vm14, %v256_v7, %v254_v27 }
  0x7e   :  { %v271_v19 = vsub.f32 %v464_v0, %v270_v16  ;;  %v272_v22 = vsub.f32 %v477_v2, %v269_v15  ;;  %v262_v24 = vsub.f32 %v464_v0, %v261_v18  ;;  %v263_v25 = vsub.f32 %v477_v2, %v260_v17 }
  0x7f   :  { %v221_v26 = vmul.f32 %v513_v23, %v181_v51  ;;  %v215_v27 = vmul.f32 %v214_v31, %v544_v44  ;;  %v227_v0 = vmul.f32 %v208_v30, %v181_v51  ;;  %vm21_vm14 = vcmp.eq.s32.totalorder %v560_v61, 0 }
  0x80   :  { %v279_v34 = vmul.f32 %v271_v19, %v271_v19  ;;  %v280_v35 = vmul.f32 %v272_v22, %v272_v22  ;;  %v277_v36 = vmul.f32 %v262_v24, %v262_v24  ;;  %v278_v39 = vmul.f32 %v263_v25, %v263_v25  ;;  %vm26_vm1 = vmor %vm21_vm14, %vm25_vm15 }
  0x81   :  { %v217_v20 = vsel %vm216_vm10, %v544_v44, %v215_v27  ;;  %v229_v40 = vadd.f32 %v227_v0, %v208_v30  ;;  %v223_v49 = vadd.f32 %v513_v23, %v221_v26 }
  0x82   :  { %v281_v42 = vadd.f32 %v279_v34, %v277_v36  ;;  %v282_v2 = vadd.f32 %v280_v35, %v278_v39  ;;  %v220_v45 = vsel %vm218_vm11, %v219_v63, %v217_v20  ;;  %v18_v20 = vld [vmem:[%s712_s2] sm:$0x3] }
  0x83   :  { %v228_v44 = vmul.f32 %v220_v45, %v196_v29  ;;  %v231_v50 = vmul.f32 2.0, %v229_v40  ;;  %v225_v51 = vsub.f32 1.5707964, %v223_v49  ;;  %v375_v54 = vperm.slane %v18_v20, 1 }
  0x84   :  { %v285_v43 = vadd.f32 %v565_v5, %v281_v42  ;;  %v286_v46 = vadd.f32 %v562_v62, %v282_v2  ;;  %v324_v47 = vpop.permute.xlu1 %323  ;;  %v322_v48 = vpop.permute.xlu0 %321 }
  0x85   :  { %v325_v52 = vsel %vm268_vm0, %v322_v48, %v324_v47  ;;  %v326_v53 = vsel %vm268_vm0, %v324_v47, %v322_v48  ;;  %v230_v57 = vadd.f32 %v228_v44, %v220_v45  ;;  %vm233_vm0 = vcmp.lt.f32.partialorder %v513_v23, 0.0 }
  0x86   :  { %v653_v55 = vadd.f32 1e-06, %v285_v43  ;;  %v655_v5 = vadd.f32 1e-06, %v286_v46  ;;  %v327_v62 = vsub.f32 %v471_v1, %v326_v53  ;;  %v328_v56 = vsub.f32 %v484_v3, %v325_v52 }
  0x87   :  { %v440_v1 = vmov 0.0   ;;  %v232_v3 = vmul.f32 2.0, %v230_v57  ;;  %v235_v63 = vsub.f32 3.1415927, %v231_v50  ;;  %v374_v53 = vperm.slane %v18_v20, 0 }
  0x88   :  { %v335_v58 = vmul.f32 %v327_v62, %v327_v62  ;;  %v336_v59 = vmul.f32 %v328_v56, %v328_v56  ;;  %430 = vrsqrt.f32 %v653_v55  ;;  %v31_v60 = vsel %vm26_vm1, 1.0, %v440_v1 }
  0x89   :  { %432 = vrsqrt.f32 %v655_v5  ;;  %v236_v7 = vsub.f32 3.1415927, %v232_v3  ;;  %v237_v23 = vsel %vm233_vm0, %v235_v63, %v231_v50  ;;  %vm296_vm6 = vcmp.eq.f32.partialorder %v653_v55, inf }
  0x8a   :  { %v337_v4 = vadd.f32 %v335_v58, %v570_v9  ;;  %v338_v6 = vadd.f32 %v336_v59, %v575_v13  ;;  %v239_v12 = vsel %vm521_vm12, %v225_v51, %v237_v23  ;;  %vm22_vm12 = vcmp.ge.s32.totalorder %v560_v61, 1 }
  0x8b   :  { %v238_v14 = vsel %vm234_vm2, %v236_v7, %v232_v3  ;;  %v241_v15 = vmul.f32 %v239_v12, %v31_v60  ;;  %vm298_vm7 = vcmp.eq.f32.partialorder %v653_v55, 0.0  ;;  %v299_v46 = vand.u32 2147483648, %v653_v55 }
  0x8c   :  { %v341_v8 = vadd.f32 %v578_v21, %v337_v4  ;;  %v342_v11 = vadd.f32 %v340_v33, %v338_v6  ;;  %v240_v9 = vsel %vm529_vm13, %v226_v10, %v238_v14  ;;  %vm24_vm13 = vmand %vm22_vm12, %vm23_vm3  ;;  %vm308_vm8 = vcmp.eq.f32.partialorder %v655_v5, inf }
  0x8d   :  { %v242_v13 = vmul.f32 %v240_v9, %v31_v60  ;;  %vm30_vm5 = vmor %vm24_vm13, %vm27_vm4  ;;  %vm310_vm9 = vcmp.eq.f32.partialorder %v655_v5, 0.0  ;;  %v311_v48 = vand.u32 2147483648, %v655_v5 }
  0x8e   :  { %v431_v16 = vpop.eup %430  ;;  %v343_v28 = vadd.f32 1e-06, %v341_v8  ;;  %v674_v17 = vadd.f32 1e-06, %v342_v11  ;;  %v32_v40 = vsel %vm30_vm5, 1.0, %v440_v1 }
  0x8f   :  { %v290_v18 = vmul.f32 %v431_v16, %v653_v55  ;;  %v433_v19 = vpop.eup %432  ;;  %v243_v22 = vadd.f32 %v242_v13, %v241_v15  ;;  %v378_v3 = vmul.f32 %v374_v53, %v32_v40  ;;  %v379_v4 = vmul.f32 %v375_v54, %v32_v40 }
  0x90   :  { %434 = vrsqrt.f32 %v343_v28  ;;  %v302_v24 = vmul.f32 %v433_v19, %v655_v5  ;;  %vm352_vm10 = vcmp.eq.f32.partialorder %v343_v28, inf  ;;  %v355_v62 = vand.u32 2147483648, %v343_v28 }
  0x91   :  { %v291_v21 = vmul.f32 %v431_v16, %v290_v18  ;;  %436 = vrsqrt.f32 %v674_v17  ;;  %244 = vadd.xlane.f32.xlu0 %v243_v22  ;;  %vm354_vm11 = vcmp.eq.f32.partialorder %v343_v28, 0.0  ;;  %vm364_vm14 = vcmp.eq.f32.partialorder %v674_v17, inf }
  0x92   :  { %v303_v25 = vmul.f32 %v433_v19, %v302_v24  ;;  %v367_v57 = vand.u32 2147483648, %v674_v17  ;;  %vm366_vm15 = vcmp.eq.f32.partialorder %v674_v17, 0.0 }
  0x93   :  { %v292_v32 = vmul.f32 0.5, %v291_v21 }
  0x94   :  { %v304_v29 = vmul.f32 0.5, %v303_v25 }
  0x95   :  { %v293_v37 = vsub.f32 1.5, %v292_v32 }
  0x96   :  { %v435_v30 = vpop.eup %434  ;;  %v305_v26 = vsub.f32 1.5, %v304_v29 }
  0x97   :  { %v437_v31 = vpop.eup %436  ;;  %v346_v34 = vmul.f32 %v435_v30, %v343_v28  ;;  %v294_v36 = vmul.f32 %v431_v16, %v293_v37 }
  0x98   :  { %v358_v35 = vmul.f32 %v437_v31, %v674_v17  ;;  %v306_v27 = vmul.f32 %v433_v19, %v305_v26 }
  0x99   :  { %v347_v39 = vmul.f32 %v435_v30, %v346_v34  ;;  %v295_v2 = vmul.f32 %v294_v36, %v653_v55 }
  0x9a   :  { %v359_v41 = vmul.f32 %v437_v31, %v358_v35  ;;  %v307_v43 = vmul.f32 %v306_v27, %v655_v5 }
  0x9b   :  { %v348_v0 = vmul.f32 0.5, %v347_v39  ;;  %v297_v49 = vsel %vm296_vm6, %v653_v55, %v295_v2 }
  0x9c   :  { %v360_v42 = vmul.f32 0.5, %v359_v41  ;;  %v309_v44 = vsel %vm308_vm8, %v655_v5, %v307_v43  ;;  %v300_v50 = vsel %vm298_vm7, %v299_v46, %v297_v49 }
  0x9d   :  { %v349_v38 = vsub.f32 1.5, %v348_v0  ;;  %v312_v51 = vsel %vm310_vm9, %v311_v48, %v309_v44 }
  0x9e   :  { %v361_v61 = vsub.f32 1.5, %v360_v42 }
  0x9f   :  { %v350_v47 = vmul.f32 %v435_v30, %v349_v38 }
  0xa0   :  { %v362_v45 = vmul.f32 %v437_v31, %v361_v61 }
  0xa1   :  { %v351_v52 = vmul.f32 %v350_v47, %v343_v28 }
  0xa2   :  { %v363_v56 = vmul.f32 %v362_v45, %v674_v17 }
  0xa3   :  { %v353_v33 = vsel %vm352_vm10, %v343_v28, %v351_v52 }
  0xa4   :  { %v356_v58 = vsel %vm354_vm11, %v355_v62, %v353_v33  ;;  %v365_v59 = vsel %vm364_vm14, %v674_v17, %v363_v56 }
  0xa5   :  { %v368_v1 = vsel %vm366_vm15, %v367_v57, %v365_v59  ;;  %v369_v60 = vsub.f32 %v300_v50, %v356_v58 }
  0xa6   :  { %v370_v63 = vsub.f32 %v312_v51, %v368_v1 }
  0xa7   :  { %v371_v6 = vand.u32 2147483647, %v369_v60 }
  0xa8   :  { %v372_v10 = vand.u32 2147483647, %v370_v63 }
  0xa9   :  { %v380_v7 = vmul.f32 %v378_v3, %v371_v6 }
  0xaa   :  { %v381_v23 = vmul.f32 %v379_v4, %v372_v10 }
  0xac   :  { %v382_v8 = vadd.f32 %v381_v23, %v380_v7 }
  0xae   :  { %383 = vadd.xlane.f32.xlu1 %v382_v8 }
  0xe2   :  { %v39_v55 = vpop.xlane.xlu2 %38 }
  0xe3   :  { %v40_v11 = vrot.slane %v39_v55, 4 }
  0xe5   :  { %v41_v12 = vadd.f32 %v40_v11, %v39_v55 }
  0xe7   :  { %v42_v14 = vrot.slane %v41_v12, 2 }
  0xe9   :  { %v43_v15 = vadd.f32 %v42_v14, %v41_v12 }
  0xeb   :  { %v44_v16 = vrot.slane %v43_v15, 1 }
  0xed   :  { %v45_v5 = vadd.f32 %v44_v16, %v43_v15 }
  0xef   :  { %405 = vpush %v45_v5 }
 0x104   :  { %v245_v28 = vpop.xlane.xlu0 %244 }
 0x105   :  { %v246_v17 = vrot.slane %v245_v28, 4 }
 0x107   :  { %v247_v9 = vadd.f32 %v246_v17, %v245_v28 }
 0x109   :  { %v248_v13 = vrot.slane %v247_v9, 2 }
 0x10b   :  { %v249_v18 = vadd.f32 %v248_v13, %v247_v9 }
 0x10d   :  { %v250_v19 = vrot.slane %v249_v18, 1 }
 0x10f   :  { %v251_v22 = vadd.f32 %v250_v19, %v249_v18 }
 0x111   :  { %407 = vpush %v251_v22 }
 0x120   :  { %s406_s2 = spop %405 }
 0x121   :  { %v384_v21 = vpop.xlane.xlu1 %383  ;;  %s392_s23 = smul.f32 0.00048828125, %s406_s2 }
 0x122   :  { %v385_v24 = vrot.slane %v384_v21, 4 }
 0x124   :  { %v386_v32 = vadd.f32 %v385_v24, %v384_v21 }
 0x126   :  { %v387_v25 = vrot.slane %v386_v32, 2 }
 0x128   :  { %v388_v37 = vadd.f32 %v387_v25, %v386_v32 }
 0x12a   :  { %v389_v29 = vrot.slane %v388_v37, 1 }
 0x12c   :  { %v390_v30 = vadd.f32 %v389_v29, %v388_v37 }
 0x12e   :  { %409 = vpush %v390_v30 }
 0x142   :  { %s408_s22 = spop %407 }
 0x143   :  { %s393_s24 = smul.f32 6.21699e-05, %s408_s22 }
 0x145   :  { %s394_s26 = sadd.f32 %s393_s24, %s392_s23 }
 0x15f   :  { %s410_s25 = spop %409 }
 0x160   :  { %s395_s27 = smul.f32 7.407407e-05, %s410_s25 }
 0x162   :  { %s396_s28 = sadd.f32 %s395_s27, %s394_s26 }
 0x164   :  { %v397_v31 = vstv %s396_s28 }
 0x165   :  { %398 = vst [vmem:[%s713_s3] sm:$0xff] %v397_v31 }

</bundles_post_ra>
